<compile_context>
chip_gen: v6e
topology: v6e:2x2x1
jax: 0.10.0
libtpu: 0.0.40
codegen_flags: <defaults>
</compile_context>

<pallas_src>
import functools

import jax
import jax.numpy as jnp
import numpy as np
from jax.experimental import pallas as pl
from jax.experimental.pallas import tpu as pltpu


def _quantile_loss_kernel(preds_ref, target_ref, w_ref, out_ref, *, quantiles,
                          inv_b):
    """One batch tile of the quantile (pinball) loss.

    preds_ref  : (Q, T, LB) VMEM  predictions, quantile-major, batch on lanes
    target_ref : (T, LB)    VMEM
    w_ref      : (T, 1)     VMEM  normalized time weights (sum to 1)
    out_ref    : (1, 1)     VMEM  persistent scalar accumulator
    """
    step = pl.program_id(0)

    @pl.when(step == 0)
    def _init():
        out_ref[...] = jnp.zeros_like(out_ref)

    target = target_ref[...].astype(jnp.float32)          # (T, LB), loaded once
    acc = jnp.zeros_like(target)
    # Q is tiny and static -> fully unrolled; preds_ref[qi] is a leading-axis
    # plane select (no within-lane slicing), q constants fold into immediates.
    for qi, q in enumerate(quantiles):
        err = target - preds_ref[qi].astype(jnp.float32)  # (T, LB) VPU op
        acc = acc + jnp.maximum((q - 1.0) * err, q * err)

    # loss contribution = sum_t w[t] * sum_b acc[t, b]:
    # lane (batch) reduce first, then T multiplies -- VPU + XLU only, no MXU.
    col = jnp.sum(acc, axis=-1, keepdims=True)             # (T, 1)
    out_ref[...] += jnp.sum(col * w_ref[...], keepdims=True)

    @pl.when(step == pl.num_programs(0) - 1)
    def _finalize():
        out_ref[...] *= inv_b                               # mean over batch


def quantile_loss_forward_qtb(preds_qtb, target_tb, quantiles, *,
                              max_block_lanes=None,
                              vmem_budget_bytes=8 * 1024 * 1024):
    """Fast path.  preds_qtb: (Q, T, B), target_tb: (T, B).

    This is the lane-dense "producer layout": quantile-major planes with the
    batch dimension minor, so no relayout is needed before the kernel.
    Returns the scalar loss, identical to QuantileLoss.forward.
    """
    Q, T, B = preds_qtb.shape
    assert target_tb.shape == (T, B)
    quantiles = tuple(float(q) for q in quantiles)
    assert len(quantiles) == Q

    isize = jnp.dtype(preds_qtb.dtype).itemsize
    # Lanes per tile such that the double-buffered (preds + target) working set
    # stays under the budget; keep a multiple of 128 (full vreg lanes).
    lanes = vmem_budget_bytes // (2 * (Q + 1) * T * isize)
    lanes = max(128, (lanes // 128) * 128)
    if max_block_lanes is not None:
        lanes = max(128, min(lanes, (max_block_lanes // 128) * 128))
    lanes = min(lanes, ((B + 127) // 128) * 128)

    # Pad the batch axis to a multiple of the tile width.  Zero padding is
    # loss-neutral (pred == target == 0 -> pinball == 0) and we divide by the
    # true B.  Producers should emit a 128-aligned batch to avoid this copy.
    b_pad = ((B + lanes - 1) // lanes) * lanes
    if b_pad != B:
        preds_qtb = jnp.pad(preds_qtb, ((0, 0), (0, 0), (0, b_pad - B)))
        target_tb = jnp.pad(target_tb, ((0, 0), (0, b_pad - B)))

    w_np = np.arange(T, 0, -1, dtype=np.float32)
    w = jnp.asarray((w_np / w_np.sum())[:, None], jnp.float32)   # (T, 1)

    grid = (b_pad // lanes,)
    kernel = functools.partial(_quantile_loss_kernel,
                               quantiles=quantiles, inv_b=1.0 / B)

    out = pl.pallas_call(
        kernel,
        out_shape=jax.ShapeDtypeStruct((1, 1), jnp.float32),
        grid=grid,
        in_specs=[
            pl.BlockSpec((Q, T, lanes), lambda i: (0, 0, i)),
            pl.BlockSpec((T, lanes), lambda i: (0, i)),
            pl.BlockSpec((T, 1), lambda i: (0, 0)),
        ],
        out_specs=pl.BlockSpec((1, 1), lambda i: (0, 0)),
        compiler_params=pltpu.CompilerParams(
            dimension_semantics=("arbitrary",),
            vmem_limit_bytes=32 * 1024 * 1024,
        ),
    )(preds_qtb, target_tb, w)
    return out[0, 0]


def quantile_loss_forward(preds_btq, target_bt, quantiles, **kwargs):
    """Drop-in path matching the PyTorch interface: preds (B, T, Q), target (B, T).

    NOTE: the relayout below reads + writes preds once in HBM before the
    kernel.  Prefer having the producing op emit (Q, T, B) / (T, B) and call
    quantile_loss_forward_qtb directly (as demonstrated in __main__).
    """
    preds_qtb = jnp.transpose(preds_btq, (2, 1, 0))
    target_tb = jnp.transpose(target_bt, (1, 0))
    return quantile_loss_forward_qtb(preds_qtb, target_tb, quantiles, **kwargs)


def reference_quantile_loss(preds_btq, target_bt, quantiles):
    """Pure-JAX mirror of the PyTorch QuantileLoss.forward (f32 math)."""
    preds = jnp.asarray(preds_btq, jnp.float32)
    target = jnp.asarray(target_bt, jnp.float32)
    losses = []
    for i, q in enumerate(quantiles):
        errors = target - preds[:, :, i]
        losses.append(jnp.maximum((q - 1.0) * errors, q * errors))
    result = sum(losses)                                    # (B, T)
    T = result.shape[1]
    w_np = np.arange(T, 0, -1, dtype=np.float32)
    w = jnp.asarray(w_np / w_np.sum())                      # (T,)
    # mean(result @ w) == weighted full reduction / B (elementwise form keeps
    # the check free of TPU default-precision matmul effects).
    return jnp.sum(result * w[None, :]) / result.shape[0]


if __name__ == "__main__":
    quantiles = (0.1, 0.5, 0.9)
    Q = len(quantiles)

    # Case 1: fast path, lane-dense producer layout (Q, T, B), bf16 storage,
    # batch tiled into a 4-step grid exercising the persistent accumulator.
    B, T = 512, 16
    kp, kt = jax.random.split(jax.random.PRNGKey(0))
    preds_qtb = jax.random.normal(kp, (Q, T, B), jnp.float32).astype(jnp.bfloat16)
    target_tb = jax.random.normal(kt, (T, B), jnp.float32).astype(jnp.bfloat16)

    loss = quantile_loss_forward_qtb(preds_qtb, target_tb, quantiles,
                                     max_block_lanes=128)
    loss = jax.block_until_ready(loss)

    ref = reference_quantile_loss(
        jnp.transpose(preds_qtb, (2, 1, 0)).astype(jnp.float32),
        jnp.transpose(target_tb).astype(jnp.float32),
        quantiles)
    np.testing.assert_allclose(np.asarray(loss), np.asarray(ref),
                               rtol=1e-4, atol=1e-6)

    # Case 2: PyTorch-layout compatibility path, batch not 128-aligned
    # (exercises the zero-padding branch), f32 storage.
    B2, T2 = 96, 24
    kp2, kt2 = jax.random.split(jax.random.PRNGKey(1))
    preds_btq = jax.random.normal(kp2, (B2, T2, Q), jnp.float32)
    target_bt = jax.random.normal(kt2, (B2, T2), jnp.float32)

    loss2 = jax.block_until_ready(
        quantile_loss_forward(preds_btq, target_bt, quantiles))
    ref2 = reference_quantile_loss(preds_btq, target_bt, quantiles)
    np.testing.assert_allclose(np.asarray(loss2), np.asarray(ref2),
                               rtol=1e-4, atol=1e-6)

    print("KERNEL_OK")
</pallas_src>

<mosaic_0001>
module attributes {stable_mosaic.version = 11 : i64} {
  func.func @_quantile_loss_kernel(%arg0: i32, %arg1: memref<3x16x128xbf16, #tpu.memory_space<vmem>>, %arg2: memref<16x128xbf16, #tpu.memory_space<vmem>>, %arg3: memref<16x1xf32, #tpu.memory_space<vmem>>, %arg4: memref<1x1xf32, #tpu.memory_space<vmem>>) attributes {dimension_semantics = [#tpu.dimension_semantics<arbitrary>], iteration_bounds = array<i64: 4>, scalar_prefetch = 0 : i64, scratch_operands = 0 : i64, tpu.core_type = #tpu.core_type<tc>, window_params = [{transform_indices = @transform_0, window_bounds = array<i64: 3, 16, 128>}, {transform_indices = @transform_1, window_bounds = array<i64: 16, 128>}, {pipeline_mode = #tpu.pipeline_mode<synchronous>, transform_indices = @transform_2, window_bounds = array<i64: 16, 1>}, {pipeline_mode = #tpu.pipeline_mode<synchronous>, transform_indices = @transform_3, window_bounds = array<i64: 1, 1>}]} {
    %c0_i32 = arith.constant 0 : i32
    %0 = arith.cmpi eq, %arg0, %c0_i32 : i32
    %1 = arith.extui %0 : i1 to i32
    %c0_i32_0 = arith.constant 0 : i32
    %2 = arith.cmpi ne, %1, %c0_i32_0 : i32
    scf.if %2 {
      %cst_24 = arith.constant 0.000000e+00 : f32
      %51 = vector.broadcast %cst_24 : f32 to vector<1x1xf32>
      %c0_25 = arith.constant 0 : index
      %c0_26 = arith.constant 0 : index
      %52 = vector.load %arg4[%c0_25, %c0_26] : memref<1x1xf32, #tpu.memory_space<vmem>>, vector<1x1xf32>
      tpu.vector_store %arg4[%c0_25, %c0_26], %51 {strides = array<i32>} : memref<1x1xf32, #tpu.memory_space<vmem>>, vector<1x1xf32>,
    } else {
    }
    %c0 = arith.constant 0 : index
    %c0_1 = arith.constant 0 : index
    %3 = vector.load %arg2[%c0, %c0_1] : memref<16x128xbf16, #tpu.memory_space<vmem>>, vector<16x128xbf16>
    %4 = arith.extf %3 : vector<16x128xbf16> to vector<16x128xf32>
    %cst = arith.constant 0.000000e+00 : f32
    %5 = vector.broadcast %cst : f32 to vector<16x128xf32>
    %c0_2 = arith.constant 0 : index
    %c0_3 = arith.constant 0 : index
    %c0_4 = arith.constant 0 : index
    %6 = vector.load %arg1[%c0_2, %c0_3, %c0_4] : memref<3x16x128xbf16, #tpu.memory_space<vmem>>, vector<1x16x128xbf16>
    %7 = vector.shape_cast %6 : vector<1x16x128xbf16> to vector<16x128xbf16>
    %8 = arith.extf %7 : vector<16x128xbf16> to vector<16x128xf32>
    %9 = arith.subf %4, %8 : vector<16x128xf32>
    %cst_5 = arith.constant -0.899999976 : f32
    %10 = vector.broadcast %cst_5 : f32 to vector<16x128xf32>
    %11 = arith.mulf %10, %9 : vector<16x128xf32>
    %cst_6 = arith.constant 1.000000e-01 : f32
    %12 = vector.broadcast %cst_6 : f32 to vector<16x128xf32>
    %13 = arith.mulf %12, %9 : vector<16x128xf32>
    %14 = arith.maximumf %11, %13 : vector<16x128xf32>
    %15 = arith.addf %5, %14 : vector<16x128xf32>
    %c1 = arith.constant 1 : index
    %c0_7 = arith.constant 0 : index
    %c0_8 = arith.constant 0 : index
    %16 = vector.load %arg1[%c1, %c0_7, %c0_8] : memref<3x16x128xbf16, #tpu.memory_space<vmem>>, vector<1x16x128xbf16>
    %17 = vector.shape_cast %16 : vector<1x16x128xbf16> to vector<16x128xbf16>
    %18 = arith.extf %17 : vector<16x128xbf16> to vector<16x128xf32>
    %19 = arith.subf %4, %18 : vector<16x128xf32>
    %cst_9 = arith.constant -5.000000e-01 : f32
    %20 = vector.broadcast %cst_9 : f32 to vector<16x128xf32>
    %21 = arith.mulf %20, %19 : vector<16x128xf32>
    %cst_10 = arith.constant 5.000000e-01 : f32
    %22 = vector.broadcast %cst_10 : f32 to vector<16x128xf32>
    %23 = arith.mulf %22, %19 : vector<16x128xf32>
    %24 = arith.maximumf %21, %23 : vector<16x128xf32>
    %25 = arith.addf %15, %24 : vector<16x128xf32>
    %c2 = arith.constant 2 : index
    %c0_11 = arith.constant 0 : index
    %c0_12 = arith.constant 0 : index
    %26 = vector.load %arg1[%c2, %c0_11, %c0_12] : memref<3x16x128xbf16, #tpu.memory_space<vmem>>, vector<1x16x128xbf16>
    %27 = vector.shape_cast %26 : vector<1x16x128xbf16> to vector<16x128xbf16>
    %28 = arith.extf %27 : vector<16x128xbf16> to vector<16x128xf32>
    %29 = arith.subf %4, %28 : vector<16x128xf32>
    %cst_13 = arith.constant -1.000000e-01 : f32
    %30 = vector.broadcast %cst_13 : f32 to vector<16x128xf32>
    %31 = arith.mulf %30, %29 : vector<16x128xf32>
    %cst_14 = arith.constant 0.899999976 : f32
    %32 = vector.broadcast %cst_14 : f32 to vector<16x128xf32>
    %33 = arith.mulf %32, %29 : vector<16x128xf32>
    %34 = arith.maximumf %31, %33 : vector<16x128xf32>
    %35 = arith.addf %25, %34 : vector<16x128xf32>
    %cst_15 = arith.constant dense<0.000000e+00> : vector<16xf32>
    %36 = vector.multi_reduction <add>, %35, %cst_15 [1] : vector<16x128xf32> to vector<16xf32>
    %37 = vector.shape_cast %36 : vector<16xf32> to vector<16x1xf32>
    %c0_16 = arith.constant 0 : index
    %c0_17 = arith.constant 0 : index
    %38 = vector.load %arg4[%c0_16, %c0_17] : memref<1x1xf32, #tpu.memory_space<vmem>>, vector<1x1xf32>
    %c0_18 = arith.constant 0 : index
    %c0_19 = arith.constant 0 : index
    %39 = vector.load %arg3[%c0_18, %c0_19] : memref<16x1xf32, #tpu.memory_space<vmem>>, vector<16x1xf32>
    %40 = arith.mulf %37, %39 : vector<16x1xf32>
    %41 = vector.shape_cast %40 : vector<16x1xf32> to vector<1x16x1xf32>
    %cst_20 = arith.constant dense<0.000000e+00> : vector<1xf32>
    %42 = vector.multi_reduction <add>, %41, %cst_20 [1, 2] : vector<1x16x1xf32> to vector<1xf32>
    %43 = vector.shape_cast %42 : vector<1xf32> to vector<1x1x1xf32>
    %44 = vector.extract %43[0, 0, 0] : f32 from vector<1x1x1xf32>
    %45 = vector.broadcast %44 : f32 to vector<1x1xf32>
    %46 = arith.addf %38, %45 : vector<1x1xf32>
    %c0_21 = arith.constant 0 : index
    %c0_22 = arith.constant 0 : index
    %47 = vector.load %arg4[%c0_21, %c0_22] : memref<1x1xf32, #tpu.memory_space<vmem>>, vector<1x1xf32>
    tpu.vector_store %arg4[%c0_21, %c0_22], %46 {strides = array<i32>} : memref<1x1xf32, #tpu.memory_space<vmem>>, vector<1x1xf32>,
    %c3_i32 = arith.constant 3 : i32
    %48 = arith.cmpi eq, %arg0, %c3_i32 : i32
    %49 = arith.extui %48 : i1 to i32
    %c0_i32_23 = arith.constant 0 : i32
    %50 = arith.cmpi ne, %49, %c0_i32_23 : i32
    scf.if %50 {
      %c0_24 = arith.constant 0 : index
      %c0_25 = arith.constant 0 : index
      %51 = vector.load %arg4[%c0_24, %c0_25] : memref<1x1xf32, #tpu.memory_space<vmem>>, vector<1x1xf32>
      %cst_26 = arith.constant 0.001953125 : f32
      %52 = vector.broadcast %cst_26 : f32 to vector<1x1xf32>
      %53 = arith.mulf %51, %52 : vector<1x1xf32>
      %c0_27 = arith.constant 0 : index
      %c0_28 = arith.constant 0 : index
      %54 = vector.load %arg4[%c0_27, %c0_28] : memref<1x1xf32, #tpu.memory_space<vmem>>, vector<1x1xf32>
      tpu.vector_store %arg4[%c0_27, %c0_28], %53 {strides = array<i32>} : memref<1x1xf32, #tpu.memory_space<vmem>>, vector<1x1xf32>,
    } else {
    }
    return
  }
  func.func @transform_0(%arg0: i32) -> (i32, i32, i32) {
    %c0_i32 = arith.constant 0 : i32
    %c0_i32_0 = arith.constant 0 : i32
    %c0_i32_1 = arith.constant 0 : i32
    return %c0_i32, %c0_i32_0, %arg0 : i32, i32, i32
  }
  func.func @transform_1(%arg0: i32) -> (i32, i32) {
    %c0_i32 = arith.constant 0 : i32
    %c0_i32_0 = arith.constant 0 : i32
    return %c0_i32, %arg0 : i32, i32
  }
  func.func @transform_2(%arg0: i32) -> (i32, i32) {
    %c0_i32 = arith.constant 0 : i32
    %c0_i32_0 = arith.constant 0 : i32
    %c0_i32_1 = arith.constant 0 : i32
    return %c0_i32, %c0_i32_0 : i32, i32
  }
  func.func @transform_3(%arg0: i32) -> (i32, i32) {
    %c0_i32 = arith.constant 0 : i32
    %c0_i32_0 = arith.constant 0 : i32
    %c0_i32_1 = arith.constant 0 : i32
    return %c0_i32, %c0_i32_0 : i32, i32
  }
}

</mosaic_0001>

<bundles_post_ra>
// kernel: tpu_custom_call.1
= control target key start
LH: loop header
LB: loop body
LE: loop exit
PB: predicated region body
PF: predicated region fallthrough
CT: control target
= control target key end

     0   :  { %8 = vsyncpa [#allocation3], 0  ;;  %s802_s0 = inlined_call_operand.hbm [shape: bf16[3,16,512], index: 0, kind: input, shape index: {}]   ;;  %s803_s1 = inlined_call_operand.hbm [shape: bf16[16,512], index: 1, kind: input, shape index: {}]   ;;  %s804_s2 = inlined_call_operand.vmem [shape: f32[16,1], index: 2, kind: input, shape index: {}]   ;;  %s805_s3 = inlined_call_operand.hbm [shape: f32[1,1], index: 3, kind: output, shape index: {}]  }
   0x1   :  { %10 = vsyncpa [#allocation3 + $0x1], 0 }
   0x2   :  { %11 = vsyncpa [#allocation6], 0 }
   0x3   :  { %13 = vsyncpa [#allocation6 + $0x1], 0 }
   0x4   :  { %14 = vsyncpa [#allocation4], 0  ;;  %s628_s12 = smov 0   ;;  %s630_s13 = smov 0  }
   0x5   :  { %s632_s14 = smov 0   ;;  %s634_s15 = smov 0  }
   0x6 LB: > { %s647_s16 = sadd.s32 4294967295, %s599_s15   ;;  %s650_s17 = sadd.s32 1, %s599_s15   ;;  %s599_s15 = sphi %s634_s15, %s814_s15   ;;  %s595_s14 = sphi %s632_s14, %s813_s14   ;;  %s591_s13 = sphi %s630_s13, %s812_s13   ;;  %s587_s12 = sphi %s628_s12, %s811_s12  }
   0x7   : > { %s24_s18 = ssub.s32 %s599_s15, %s650_s17  ;;  %s27_s19 = sadd.s32 1, %s595_s14 }
   0x8   : > { %p25_p0 = scmp.eq.s32.totalorder %s24_s18, 0  ;;  %p34_p1 = scmp.ne.s32.totalorder %s595_s14, %s591_s13 }
   0x9   : > { %p35_p2 = scmp.eq.s32.totalorder %s599_s15, 0  ;;  %p40_p3 = scmp.ne.s32.totalorder %s591_s13, %s587_s12 }
   0xa   : > { %s660_s20 = scalar_select %p25_p0, %s595_s14, %s27_s19  }
   0xb   : > { %p36_p4 = por %p35_p2, %p34_p1  ;;  %p41_p5 = scmp.eq.s32.totalorder %s647_s16, 0 }
   0xc   : > { %p437_p6 = scmp.lt.s32.totalorder %s599_s15, 4  ;;  %s669_s22 = sand.u32 1, %s595_s14  }
   0xd   : > { %p664_p7 = por %p41_p5, %p40_p3  ;;  %s418_s23 = smul.u32 24, %s669_s22 }
   0xe   : > { %s385_s24 = sshll.u32 %s599_s15, 6  ;;  %p673_p8 = pnand %p437_p6, %p36_p4 }
   0xf   : > { %s807_s21 = scalar_select %p664_p7, 1, 0 }
  0x10   : > { %s682_s28 = scalar_lea.hbm %s802_s0, %s385_s24  ;;  %s139_s29 = scalar_lea.vmem [#allocation2], %s418_s23 }
  0x11   : > { %s145_s30 = sshll.u32 %s139_s29, 4  ;;  %s136_s4 = scalar_lea.sflag [#allocation3], %s669_s22  ;;  %s684_s30 = int_to_ptr.vmem [resolvable:$true] %s145_s30 }
  0x12   : > { %s477_s5 = scalar_lea.hbm %s682_s28, 384  ;;  %p479_p10 = pneg %p673_p8 }
  0x13   : > { %p478_p9 = scmp.ne.s32.totalorder %s682_s28, %s477_s5  ;;  %s482_s8 = scalar_lea.hbm %s802_s0, 1536 }
  0x14   : > { %p483_p13 = scmp.lt.s32.totalorder %s682_s28, %s802_s0  ;;  %p484_p0 = scmp.lt.s32.totalorder %s482_s8, %s477_s5 }
  0x15   : > { %p480_p11 = pnand %p479_p10, %p478_p9 }
  0x16   : > { %p485_p1 = por %p484_p0, %p483_p13 }
  0x17   : > { %p481_p12 = pneg %p480_p11 }
  0x19   : > { %p486_p2 = pnand %p485_p1, %p481_p12 }
  0x1b   : > { %489 = shalt.err (!%p486_p2)
}
  0x1c   : > { %s490_s11 = scalar_lea.vmem %s684_s30, 384  ;;  %s601_s12 = smov [#allocation2]  }
  0x1d   : > { %p491_p3 = scmp.ne.s32.totalorder %s684_s30, %s490_s11  ;;  %s495_s18 = sshll.u32 %s601_s12, 4  ;;  %s496_s18 = int_to_ptr.vmem [resolvable:$false] %s495_s18 }
  0x1e   : > { %s497_s19 = scalar_lea.vmem %s496_s18, 768  ;;  %p498_p6 = scmp.lt.s32.totalorder %s684_s30, %s496_s18 }
  0x1f   : > { %p493_p4 = pnand %p491_p3, %p479_p10  ;;  %p499_p9 = scmp.lt.s32.totalorder %s497_s19, %s490_s11 }
  0x21   : > { %p494_p5 = pneg %p493_p4  ;;  %p500_p11 = por %p499_p9, %p498_p6 }
  0x23   : > { %p501_p13 = pnand %p500_p11, %p494_p5 }
  0x25   : > { %504 = shalt.err (!%p501_p13)
}
  0x26   : > { %s602_s23 = smov 256   ;;  %s603_s26 = smov 64  }
  0x27   : > { %s604_s27 = smov 4   ;;  %p388_p12 = scmp.ge.s32.totalorder %s599_s15, 1 }
  0x28   : > { %433 = dma.hbm_to_vmem [thread:$0]  (!%p673_p8), %s682_s28, 384, %s684_s30, %s136_s4, %s602_s23, %s603_s26, %s604_s27  }
  0x29   : > { %p173_p0 = scmp.lt.s32.totalorder %s599_s15, 5  ;;  %s386_s29 = sshll.u32 %s669_s22, 3 }
  0x2a   : > { %s728_s8 = scalar_lea.hbm %s803_s1, %s385_s24  ;;  %s159_s9 = scalar_lea.vmem [#allocation5], %s386_s29 }
  0x2b   : > { %p719_p1 = pnand %p388_p12, %p173_p0  ;;  %s165_s10 = sshll.u32 %s159_s9, 4  ;;  %s730_s10 = int_to_ptr.vmem [resolvable:$true] %s165_s10 }
  0x2c   : > { %s156_s28 = scalar_lea.sflag [#allocation6], %s669_s22  ;;  %s505_s30 = scalar_lea.hbm %s728_s8, 128 }
  0x2d   : > { %p506_p2 = scmp.ne.s32.totalorder %s728_s8, %s505_s30  ;;  %s510_s11 = scalar_lea.hbm %s803_s1, 512 }
  0x2e   : > { %p511_p5 = scmp.lt.s32.totalorder %s728_s8, %s803_s1  ;;  %p512_p6 = scmp.lt.s32.totalorder %s510_s11, %s505_s30 }
  0x2f   : > { %p508_p3 = pnand %p506_p2, %p479_p10 }
  0x30   : > { %p513_p9 = por %p512_p6, %p511_p5 }
  0x31   : > { %p509_p4 = pneg %p508_p3 }
  0x33   : > { %p514_p11 = pnand %p513_p9, %p509_p4 }
  0x35   : > { %517 = shalt.err (!%p514_p11)
}
  0x36   : > { %s518_s22 = scalar_lea.vmem %s730_s10, 128  ;;  %s605_s18 = smov [#allocation5]  }
  0x37   : > { %p519_p13 = scmp.ne.s32.totalorder %s730_s10, %s518_s22  ;;  %s523_s19 = sshll.u32 %s605_s18, 4  ;;  %s524_s19 = int_to_ptr.vmem [resolvable:$false] %s523_s19 }
  0x38   : > { %s525_s29 = scalar_lea.vmem %s524_s19, 256  ;;  %p526_p2 = scmp.lt.s32.totalorder %s730_s10, %s524_s19 }
  0x39   : > { %p521_p12 = pnand %p519_p13, %p479_p10  ;;  %p527_p3 = scmp.lt.s32.totalorder %s525_s29, %s518_s22 }
  0x3b   : > { %p522_p0 = pneg %p521_p12  ;;  %p528_p7 = por %p527_p3, %p526_p2 }
  0x3d   : > { %p529_p5 = pnand %p528_p7, %p522_p0 }
  0x3f   : > { %532 = shalt.err (!%p529_p5)
}
  0x40   : > { %436 = dma.hbm_to_vmem [thread:$0]  (!%p673_p8), %s728_s8, 128, %s730_s10, %s156_s28, %s602_s23, %s603_s26, %s604_s27  }
  0x41   : > { %177 = sbr.rel (%p719_p1) target bundleno = 473 (0x1d9), region = 32  ;;  %s179_s6 = sand.u32 (!%p719_p1), 1, %s591_s13  }
  0x42   : > { %s419_s7 = smul.u32 (!%p719_p1), 24, %s179_s6  ;;  %s180_s9 = scalar_lea.sflag (!%p719_p1), [#allocation3], %s179_s6 }
  0x43   : > { %p810_p10 = scmp.ne.s32.totalorder (!%p719_p1), %s807_s21, 0 }
  0x44   : > { %s183_s30 = scalar_lea.vmem (!%p719_p1), [#allocation2], %s419_s7 }
  0x46   : > { %574 = dma.done.wait (%p810_p10), %s180_s9, 384  }
  0x47   : > { %576 = vsyncadd (%p810_p10), %s180_s9, 4294966912  ;;  %s389_s25 = sshll.u32 %s179_s6, 3  ;;  %s189_s15 = scalar_lea.sflag [#allocation6], %s179_s6 }
  0x48   : > { %s192_s4 = scalar_lea.vmem [#allocation5], %s389_s25 }
  0x49   : > { %578 = dma.done.wait (%p810_p10), %s189_s15, 128  }
  0x4a   : > { %580 = vsyncadd (%p810_p10), %s189_s15, 4294967168  ;;  %p390_p7 = scmp.ne.s32.totalorder %s647_s16, 0 }
  0x4c   : > { %218 = sbr.rel (%p390_p7) target bundleno = 83 (0x53), region = 44 }
  0x51   : > { %vm219_vm0 = vcmask 0   ;;  %v606_v0 = vmov 0.0  }
  0x52   : > { %220 = vst.msk [vmem:[#allocation7] sm:$0x1] %vm219_vm0, %v606_v0 }
  0x53 PF: > { %v401_v1 = vld [vmem:[%s192_s4] sm:$0xff]   ;;  %v416_v3 = vld [vmem:[%s183_s30 + $0x8] sm:$0xff]   ;;  %vm278_vm1 = vcmask 7168   ;;  %vm293_vm2 = vcmask 0   ;;  %p395_p8 = scmp.ne.s32.totalorder %s647_s16, 3 }
  0x54   : > { %v405_v2 = vld [vmem:[%s183_s30] sm:$0xff]   ;;  %v402_v4 = vunpack.c.l.bf16 %v401_v1  ;;  %v410_v6 = vunpack.c.l.bf16 %v416_v3  ;;  %v417_v7 = vld [vmem:[%s183_s30 + $0x10] sm:$0xff]   ;;  %v403_v8 = vunpack.c.h.bf16 %v401_v1  ;;  %v411_v11 = vunpack.c.h.bf16 %v416_v3 }
  0x55   : > { %v406_v5 = vunpack.c.l.bf16 %v405_v2  ;;  %v414_v9 = vunpack.c.l.bf16 %v417_v7  ;;  %v407_v10 = vunpack.c.h.bf16 %v405_v2  ;;  %v415_v12 = vunpack.c.h.bf16 %v417_v7  ;;  %v274_v41 = vld [vmem:[%s804_s2] sm:$0xff]  ;;  %v275_v43 = vld [vmem:[%s804_s2 + $0x8] sm:$0xff] }
  0x56   : > { %v244_v14 = vsub.f32 %v402_v4, %v410_v6  ;;  %v245_v17 = vsub.f32 %v403_v8, %v411_v11 }
  0x57   : > { %v229_v13 = vsub.f32 %v402_v4, %v406_v5  ;;  %v259_v15 = vsub.f32 %v402_v4, %v414_v9  ;;  %v230_v16 = vsub.f32 %v403_v8, %v407_v10  ;;  %v260_v18 = vsub.f32 %v403_v8, %v415_v12 }
  0x58   : > { %v246_v21 = vmul.f32 -0.5, %v244_v14  ;;  %v248_v22 = vmul.f32 0.5, %v244_v14  ;;  %v247_v29 = vmul.f32 -0.5, %v245_v17  ;;  %v249_v31 = vmul.f32 0.5, %v245_v17 }
  0x59   : > { %v231_v19 = vmul.f32 -0.9, %v229_v13  ;;  %v233_v20 = vmul.f32 0.1, %v229_v13  ;;  %v261_v23 = vmul.f32 -0.1, %v259_v15 }
  0x5a   : > { %v263_v24 = vmul.f32 0.9, %v259_v15  ;;  %v232_v25 = vmul.f32 -0.9, %v230_v16  ;;  %v250_v27 = vmax.f32 %v246_v21, %v248_v22  ;;  %v234_v28 = vmul.f32 0.1, %v230_v16 }
  0x5b   : > { %v235_v26 = vmax.f32 %v231_v19, %v233_v20  ;;  %v262_v32 = vmul.f32 -0.1, %v260_v18  ;;  %v264_v33 = vmul.f32 0.9, %v260_v18  ;;  %v251_v36 = vmax.f32 %v247_v29, %v249_v31  ;;  %v273_v57 = vld [vmem:[#allocation7] sm:$0x1] }
  0x5c   : > { %v265_v30 = vmax.f32 %v261_v23, %v263_v24  ;;  %v236_v35 = vmax.f32 %v232_v25, %v234_v28 }
  0x5d   : > { %v252_v34 = vadd.f32 %v250_v27, %v235_v26  ;;  %v266_v37 = vmax.f32 %v262_v32, %v264_v33 }
  0x5e   : > { %v253_v39 = vadd.f32 %v251_v36, %v236_v35 }
  0x5f   : > { %v267_v38 = vadd.f32 %v265_v30, %v252_v34 }
  0x60   : > { %v268_v40 = vadd.f32 %v266_v37, %v253_v39 }
  0x61   : > { %269 = vadd.xlane.f32.xlu0 %v267_v38 }
  0x65   : > { %271 = vadd.xlane.f32.xlu0 %v268_v40 }
  0xea   : > { %v270_v42 = vpop.xlane.xlu0 %269 }
  0xeb   : > { %v276_v44 = vmul.f32 %v274_v41, %v270_v42 }
  0xed   : > { %v279_v47 = vsel %vm278_vm1, %v276_v44, 0.0 }
  0xee   : > { %v272_v45 = vpop.xlane.xlu0 %271 }
  0xef   : > { %v277_v46 = vmul.f32 %v275_v43, %v272_v45 }
  0xf1   : > { %v280_v48 = vsel %vm278_vm1, %v277_v46, 0.0 }
  0xf2   : > { %v281_v49 = vadd.f32 %v280_v48, %v279_v47 }
  0xf4   : > { %282 = vadd.xlane.f32.xlu1 %v281_v49 }
 0x17d   : > { %v283_v50 = vpop.xlane.xlu1 %282 }
 0x17e   : > { %v284_v51 = vrot.slane %v283_v50, 4 }
 0x180   : > { %v285_v52 = vadd.f32 %v284_v51, %v283_v50 }
 0x182   : > { %v286_v53 = vrot.slane %v285_v52, 2 }
 0x184   : > { %v287_v54 = vadd.f32 %v286_v53, %v285_v52 }
 0x186   : > { %v288_v55 = vrot.slane %v287_v54, 1 }
 0x188   : > { %v289_v56 = vadd.f32 %v288_v55, %v287_v54 }
 0x18a   : > { %420 = vpush %v289_v56 }
 0x1bb   : > { %s421_s5 = spop %420  ;;  %298 = sbr.rel (%p395_p8) target bundleno = 458 (0x1ca), region = 48 }
 0x1bc   : > { %v291_v58 = vstv %s421_s5 }
 0x1bd   : > { %v292_v59 = vadd.f32 %v291_v58, %v273_v57 }
 0x1bf   : > { %294 = vst.msk [vmem:[#allocation7] sm:$0x1] %vm293_vm2, %v292_v59 }
 0x1c6   : > { %v299_v60 = vld [vmem:[#allocation7] sm:$0x1] }
 0x1c7   : > { %v300_v61 = vmul.f32 0.001953125, %v299_v60 }
 0x1c9   : > { %301 = vst.msk [vmem:[#allocation7] sm:$0x1] %vm293_vm2, %v300_v61 }
 0x1ca PF: > { %p438_p1 = scmp.eq.s32.totalorder %s647_s16, 3  ;;  %s607_s8 = smov [#allocation7]  }
 0x1cb   : > { %s309_s10 = sshll.u32 %s607_s8, 4  ;;  %s310_s10 = int_to_ptr.vmem [resolvable:$true] %s309_s10 }
 0x1cc   : > { %s533_s28 = scalar_lea.vmem %s310_s10, 16  ;;  %s539_s11 = scalar_lea.vmem %s310_s10, 32 }
 0x1cd   : > { %p534_p4 = scmp.ne.s32.totalorder %s310_s10, %s533_s28  ;;  %p540_p11 = scmp.lt.s32.totalorder %s310_s10, %s310_s10 }
 0x1ce   : > { %p541_p13 = scmp.lt.s32.totalorder %s539_s11, %s533_s28 }
 0x1cf   : > { %p535_p6 = pnand %p534_p4, %p438_p1 }
 0x1d0   : > { %p542_p12 = por %p541_p13, %p540_p11 }
 0x1d1   : > { %p536_p9 = pneg %p535_p6 }
 0x1d3   : > { %p543_p0 = pnand %p542_p12, %p536_p9 }
 0x1d5   : > { %546 = shalt.err (!%p543_p0)
}
 0x1d6   : > { %427 = dma.vmem_to_hbm [thread:$0]  (%p438_p1), %s310_s10, 16, %s805_s3, [#allocation4]  }
 0x1d7   : > { %582 = dma.done.wait (%p438_p1), [#allocation4], 16  }
 0x1d8   : > { %584 = vsyncadd (%p438_p1), [#allocation4], 4294967280 }
 0x1d9 PF: > { %p17_p2 = scmp.ge.s32.totalorder %s650_s17, 6   ;;  %s811_s12 = smov %s591_s13 }
 0x1da   : > { %s812_s13 = smov %s595_s14  ;;  %s813_s14 = smov %s660_s20 }
 0x1db   : > { %s814_s15 = smov %s650_s17  ;;  %19 = sbr.rel (!%p17_p2) target bundleno = 6 (0x6), region = 92 }
 0x1e0   :  { %322 = vsyncpa [#allocation3], 1 }
 0x1e1   :  { %324 = vsyncpa [#allocation3 + $0x1], 1 }
 0x1e2   :  { %325 = vsyncpa [#allocation6], 1 }
 0x1e3   :  { %327 = vsyncpa [#allocation6 + $0x1], 1 }
 0x1e4   :  { %328 = vsyncpa [#allocation4], 1 }
 0x1e5   :  { %330 = vsyncpa [#allocation4 + $0x1], 1 }

</bundles_post_ra>
